<compile_context>
chip_gen: v6e
topology: v6e:2x2x1
jax: 0.10.0
libtpu: 0.0.40
codegen_flags: <defaults>
</compile_context>

<pallas_src>
from functools import partial

import jax
import jax.numpy as jnp
from jax.experimental import pallas as pl
from jax.experimental.pallas import tpu as pltpu


# ---------------------------------------------------------------------------
# In-kernel helpers
# ---------------------------------------------------------------------------
def _mlp(x, layer_refs):
    """x -> Linear(+tanh on hidden layers) chain; layer_refs = (w0, b0, w1, b1, ...)."""
    n = len(layer_refs) // 2
    for i in range(n):
        w = layer_refs[2 * i][...]
        b = layer_refs[2 * i + 1][...]          # (1, out) -> broadcasts over rows
        x = jnp.dot(x, w, preferred_element_type=jnp.float32) + b
        if i < n - 1:                           # tanh on hidden layers only
            x = jnp.tanh(x)
    return x


def _don_fused_kernel(*refs, n_layers: int, p: int):
    """refs = (u, y, w0u, w0y, b0, w1, b1, ..., tau, out).

    Branch/trunk are computed as one concatenated stream: layer 0 uses zero-padded
    weights (one dot per input stream), later layers use block-diagonal weights
    (one dot per layer).  Lanes [:p] are B, lanes [p:] are T.
    """
    u_ref, y_ref = refs[0], refs[1]
    w0u_ref, w0y_ref, b0_ref = refs[2], refs[3], refs[4]
    rest = refs[5:5 + 2 * (n_layers - 1)]
    tau_ref = refs[5 + 2 * (n_layers - 1)]
    o_ref = refs[6 + 2 * (n_layers - 1)]

    x = (jnp.dot(u_ref[...], w0u_ref[...], preferred_element_type=jnp.float32)
         + jnp.dot(y_ref[...], w0y_ref[...], preferred_element_type=jnp.float32)
         + b0_ref[...])
    if n_layers > 1:
        x = jnp.tanh(x)                         # layer 0 is a hidden layer
        x = _mlp(x, rest)                       # one block-diag matmul per layer

    B = x[:, :p]                                # (tm, p)
    T = x[:, p:]                                # (tm, p)
    g = jnp.sum(B * T, axis=-1, keepdims=True)  # XLU lane reduce -> (tm, 1)
    o_ref[...] = g + tau_ref[0, 0]              # tau is an SMEM scalar


def _don_separate_kernel(*refs, n_branch: int, n_trunk: int):
    """Fallback when branch/trunk depths differ: two independent MLPs in-kernel."""
    u_ref, y_ref = refs[0], refs[1]
    branch_refs = refs[2: 2 + 2 * n_branch]
    trunk_refs = refs[2 + 2 * n_branch: 2 + 2 * (n_branch + n_trunk)]
    tau_ref = refs[2 + 2 * (n_branch + n_trunk)]
    o_ref = refs[3 + 2 * (n_branch + n_trunk)]

    B = _mlp(u_ref[...], branch_refs)
    T = _mlp(y_ref[...], trunk_refs)
    g = jnp.sum(B * T, axis=-1, keepdims=True)
    o_ref[...] = g + tau_ref[0, 0]


# ---------------------------------------------------------------------------
# Wrapper: one pallas_call for the whole DeepONet forward.
# ---------------------------------------------------------------------------
def _round_up(x, m):
    return ((x + m - 1) // m) * m


def classical_don_forward(u, y, branch_params, trunk_params, tau=None,
                          use_bias=True, *, block_m=2048, min_split=512):
    M, d_u = u.shape
    d_y = y.shape[1]
    nb, nt = len(branch_params), len(trunk_params)
    p = branch_params[-1][0].shape[1]
    assert trunk_params[-1][0].shape[1] == p, "branch/trunk latent dims must match"

    u = u.astype(jnp.float32)
    y = y.astype(jnp.float32)

    if use_bias and tau is not None:
        tau_arr = jnp.reshape(tau, (1, 1)).astype(jnp.float32)
    else:
        tau_arr = jnp.zeros((1, 1), jnp.float32)   # no-bias path: add 0

    fused = (nb == nt)
    if fused:
        # Build zero-padded / block-diagonal fused weights once in the wrapper.
        (wb0, bb0), (wt0, bt0) = branch_params[0], trunk_params[0]
        h_b, h_t = wb0.shape[1], wt0.shape[1]
        w0u = jnp.concatenate(
            [wb0.astype(jnp.float32), jnp.zeros((d_u, h_t), jnp.float32)], axis=1)
        w0y = jnp.concatenate(
            [jnp.zeros((d_y, h_b), jnp.float32), wt0.astype(jnp.float32)], axis=1)
        b0 = jnp.concatenate([bb0, bt0], axis=1).astype(jnp.float32)
        flat_params = [w0u, w0y, b0]
        for (wb, bb), (wt, bt) in zip(branch_params[1:], trunk_params[1:]):
            kb, ob = wb.shape
            kt, ot = wt.shape
            w = jnp.zeros((kb + kt, ob + ot), jnp.float32)
            w = w.at[:kb, :ob].set(wb)
            w = w.at[kb:, ob:].set(wt)
            b = jnp.concatenate([bb, bt], axis=1).astype(jnp.float32)
            flat_params.extend((w, b))
        kernel = partial(_don_fused_kernel, n_layers=nb, p=p)
    else:
        flat_params = []
        for w, b in list(branch_params) + list(trunk_params):
            flat_params.extend((w.astype(jnp.float32), b.astype(jnp.float32)))
        kernel = partial(_don_separate_kernel, n_branch=nb, n_trunk=nt)

    # Batch tiling: no wrapper-side padding; the last partial tile's OOB reads are
    # padded and its OOB writes masked by Pallas.  tm is kept a multiple of 8.
    m8 = _round_up(max(M, 1), 8)
    num_tiles = pl.cdiv(m8, block_m)
    if num_tiles == 1 and m8 >= 2 * min_split:
        num_tiles = 2                       # v7x: give both TensorCores a tile
    tm = _round_up(pl.cdiv(m8, num_tiles), 8)
    grid = (pl.cdiv(M, tm),)

    in_specs = [
        pl.BlockSpec((tm, d_u), lambda i: (i, 0)),   # u batch tile
        pl.BlockSpec((tm, d_y), lambda i: (i, 0)),   # y batch tile
    ]
    # Weights / biases: full blocks with constant index_map -> VMEM-resident.
    for arr in flat_params:
        in_specs.append(pl.BlockSpec(arr.shape, lambda i: (0, 0)))
    # tau: single learned scalar, kept in SMEM (no padded/double-buffered VMEM block).
    in_specs.append(pl.BlockSpec(memory_space=pltpu.MemorySpace.SMEM))

    out = pl.pallas_call(
        kernel,
        grid=grid,
        out_shape=jax.ShapeDtypeStruct((M, 1), jnp.float32),
        in_specs=in_specs,
        out_specs=pl.BlockSpec((tm, 1), lambda i: (i, 0)),
        compiler_params=pltpu.CompilerParams(
            dimension_semantics=("parallel",),   # shard batch tiles across TCs (v7x)
        ),
    )(u, y, *flat_params, tau_arr)

    return out


# ---------------------------------------------------------------------------
# Parameter construction (deterministic, synthetic)
# ---------------------------------------------------------------------------
def init_fnn_params(key, layer_sizes):
    """Glorot-uniform-ish deterministic init for an MLP with given layer sizes."""
    params = []
    for i in range(len(layer_sizes) - 1):
        key, kw, kb = jax.random.split(key, 3)
        fan_in, fan_out = layer_sizes[i], layer_sizes[i + 1]
        bound = (6.0 / (fan_in + fan_out)) ** 0.5
        w = jax.random.uniform(kw, (fan_in, fan_out), jnp.float32, -bound, bound)
        b = jax.random.uniform(kb, (1, fan_out), jnp.float32, -bound, bound)
        params.append((w, b))
    return params


# ---------------------------------------------------------------------------
# Pure-JAX reference (for sanity check)
# ---------------------------------------------------------------------------
def ref_forward(u, y, branch_params, trunk_params, tau):
    def mlp(x, params):
        n = len(params)
        for i, (w, b) in enumerate(params):
            x = x @ w + b
            if i < n - 1:
                x = jnp.tanh(x)
        return x

    B = mlp(u, branch_params)
    T = mlp(y, trunk_params)
    G = jnp.sum(B * T, axis=-1, keepdims=True)
    return G + tau


if __name__ == "__main__":
    key = jax.random.PRNGKey(0)
    k_u, k_y, k_branch, k_trunk, k_tau = jax.random.split(key, 5)

    batch = 8
    branch_in = 16   # number of sensor points for u
    trunk_in = 2     # coordinate dimension for y
    hidden = 32
    p = 32           # interaction (basis) dimension

    # branch layers = [16, 32, 32], trunk layers = [2, 32, 32]
    branch_params = init_fnn_params(k_branch, [branch_in, hidden, p])
    trunk_params = init_fnn_params(k_trunk, [trunk_in, hidden, p])
    tau = jax.random.uniform(k_tau, (1,), jnp.float32)  # torch.rand(1)

    u = jax.random.normal(k_u, (batch, branch_in), jnp.float32)
    y = jax.random.normal(k_y, (batch, trunk_in), jnp.float32)

    out = classical_don_forward(u, y, branch_params, trunk_params, tau, use_bias=True)
    out = jax.block_until_ready(out)

    expected = ref_forward(u, y, branch_params, trunk_params, tau)
    assert out.shape == (batch, 1), out.shape
    assert jnp.allclose(out, expected, atol=1e-4, rtol=1e-4), (out, expected)

    print("KERNEL_OK")
</pallas_src>

<mosaic_0001>
module attributes {stable_mosaic.version = 11 : i64} {
  func.func @_don_fused_kernel(%arg0: i32, %arg1: memref<8x16xf32, #tpu.memory_space<vmem>>, %arg2: memref<8x2xf32, #tpu.memory_space<vmem>>, %arg3: memref<16x64xf32, #tpu.memory_space<vmem>>, %arg4: memref<2x64xf32, #tpu.memory_space<vmem>>, %arg5: memref<1x64xf32, #tpu.memory_space<vmem>>, %arg6: memref<64x64xf32, #tpu.memory_space<vmem>>, %arg7: memref<1x64xf32, #tpu.memory_space<vmem>>, %arg8: memref<1x1xf32, #tpu.memory_space<smem>>, %arg9: memref<8x1xf32, #tpu.memory_space<vmem>>) attributes {dimension_semantics = [#tpu.dimension_semantics<parallel>], iteration_bounds = array<i64: 1>, scalar_prefetch = 0 : i64, scratch_operands = 0 : i64, tpu.core_type = #tpu.core_type<tc>, window_params = [{transform_indices = @transform_0, window_bounds = array<i64: 8, 16>}, {transform_indices = @transform_1, window_bounds = array<i64: 8, 2>}, {pipeline_mode = #tpu.pipeline_mode<synchronous>, transform_indices = @transform_2, window_bounds = array<i64: 16, 64>}, {pipeline_mode = #tpu.pipeline_mode<synchronous>, transform_indices = @transform_3, window_bounds = array<i64: 2, 64>}, {pipeline_mode = #tpu.pipeline_mode<synchronous>, transform_indices = @transform_4, window_bounds = array<i64: 1, 64>}, {pipeline_mode = #tpu.pipeline_mode<synchronous>, transform_indices = @transform_5, window_bounds = array<i64: 64, 64>}, {pipeline_mode = #tpu.pipeline_mode<synchronous>, transform_indices = @transform_6, window_bounds = array<i64: 1, 64>}, {transform_indices = @transform_7, window_bounds = array<i64: 1, 1>}, {transform_indices = @transform_8, window_bounds = array<i64: 8, 1>}]} {
    %c0 = arith.constant 0 : index
    %c0_0 = arith.constant 0 : index
    %0 = vector.load %arg1[%c0, %c0_0] : memref<8x16xf32, #tpu.memory_space<vmem>>, vector<8x16xf32>
    %c0_1 = arith.constant 0 : index
    %c0_2 = arith.constant 0 : index
    %1 = vector.load %arg3[%c0_1, %c0_2] : memref<16x64xf32, #tpu.memory_space<vmem>>, vector<16x64xf32>
    %cst = arith.constant dense<0.000000e+00> : vector<8x64xf32>
    %2 = tpu.matmul %0, %1, %cst {dimension_numbers = #tpu.dot_dimension_numbers<[1], [0], [0], [1], [0, 0, 1, 1], [], []>} : vector<8x16xf32>, vector<16x64xf32>, vector<8x64xf32> -> vector<8x64xf32>
    %c0_3 = arith.constant 0 : index
    %c0_4 = arith.constant 0 : index
    %3 = vector.load %arg2[%c0_3, %c0_4] : memref<8x2xf32, #tpu.memory_space<vmem>>, vector<8x2xf32>
    %c0_5 = arith.constant 0 : index
    %c0_6 = arith.constant 0 : index
    %4 = vector.load %arg4[%c0_5, %c0_6] : memref<2x64xf32, #tpu.memory_space<vmem>>, vector<2x64xf32>
    %cst_7 = arith.constant dense<0.000000e+00> : vector<8x64xf32>
    %5 = tpu.matmul %3, %4, %cst_7 {dimension_numbers = #tpu.dot_dimension_numbers<[1], [0], [0], [1], [0, 0, 1, 1], [], []>} : vector<8x2xf32>, vector<2x64xf32>, vector<8x64xf32> -> vector<8x64xf32>
    %6 = arith.addf %2, %5 : vector<8x64xf32>
    %c0_8 = arith.constant 0 : index
    %c0_9 = arith.constant 0 : index
    %7 = vector.load %arg5[%c0_8, %c0_9] : memref<1x64xf32, #tpu.memory_space<vmem>>, vector<1x64xf32>
    %8 = vector.broadcast %7 : vector<1x64xf32> to vector<8x64xf32>
    %9 = arith.addf %6, %8 : vector<8x64xf32>
    %10 = math.tanh %9 : vector<8x64xf32>
    %c0_10 = arith.constant 0 : index
    %c0_11 = arith.constant 0 : index
    %11 = vector.load %arg6[%c0_10, %c0_11] : memref<64x64xf32, #tpu.memory_space<vmem>>, vector<64x64xf32>
    %c0_12 = arith.constant 0 : index
    %c0_13 = arith.constant 0 : index
    %12 = vector.load %arg7[%c0_12, %c0_13] : memref<1x64xf32, #tpu.memory_space<vmem>>, vector<1x64xf32>
    %cst_14 = arith.constant dense<0.000000e+00> : vector<8x64xf32>
    %13 = tpu.matmul %10, %11, %cst_14 {dimension_numbers = #tpu.dot_dimension_numbers<[1], [0], [0], [1], [0, 0, 1, 1], [], []>} : vector<8x64xf32>, vector<64x64xf32>, vector<8x64xf32> -> vector<8x64xf32>
    %14 = vector.broadcast %12 : vector<1x64xf32> to vector<8x64xf32>
    %15 = arith.addf %13, %14 : vector<8x64xf32>
    %16 = vector.extract_strided_slice %15 {offsets = [0, 0], sizes = [8, 32], strides = [1, 1]} : vector<8x64xf32> to vector<8x32xf32>
    %17 = vector.extract_strided_slice %15 {offsets = [0, 32], sizes = [8, 32], strides = [1, 1]} : vector<8x64xf32> to vector<8x32xf32>
    %18 = arith.mulf %16, %17 : vector<8x32xf32>
    %cst_15 = arith.constant dense<0.000000e+00> : vector<8xf32>
    %19 = vector.multi_reduction <add>, %18, %cst_15 [1] : vector<8x32xf32> to vector<8xf32>
    %20 = vector.shape_cast %19 : vector<8xf32> to vector<8x1xf32>
    %c0_16 = arith.constant 0 : index
    %c0_17 = arith.constant 0 : index
    %21 = memref.load %arg8[%c0_16, %c0_17] : memref<1x1xf32, #tpu.memory_space<smem>>
    %22 = vector.broadcast %21 : f32 to vector<8x1xf32>
    %23 = arith.addf %20, %22 : vector<8x1xf32>
    %c0_18 = arith.constant 0 : index
    %c0_19 = arith.constant 0 : index
    %24 = vector.load %arg9[%c0_18, %c0_19] : memref<8x1xf32, #tpu.memory_space<vmem>>, vector<8x1xf32>
    tpu.vector_store %arg9[%c0_18, %c0_19], %23 {strides = array<i32>} : memref<8x1xf32, #tpu.memory_space<vmem>>, vector<8x1xf32>,
    return
  }
  func.func @transform_0(%arg0: i32) -> (i32, i32) {
    %c0_i32 = arith.constant 0 : i32
    %c0_i32_0 = arith.constant 0 : i32
    return %arg0, %c0_i32 : i32, i32
  }
  func.func @transform_1(%arg0: i32) -> (i32, i32) {
    %c0_i32 = arith.constant 0 : i32
    %c0_i32_0 = arith.constant 0 : i32
    return %arg0, %c0_i32 : i32, i32
  }
  func.func @transform_2(%arg0: i32) -> (i32, i32) {
    %c0_i32 = arith.constant 0 : i32
    %c0_i32_0 = arith.constant 0 : i32
    %c0_i32_1 = arith.constant 0 : i32
    return %c0_i32, %c0_i32_0 : i32, i32
  }
  func.func @transform_3(%arg0: i32) -> (i32, i32) {
    %c0_i32 = arith.constant 0 : i32
    %c0_i32_0 = arith.constant 0 : i32
    %c0_i32_1 = arith.constant 0 : i32
    return %c0_i32, %c0_i32_0 : i32, i32
  }
  func.func @transform_4(%arg0: i32) -> (i32, i32) {
    %c0_i32 = arith.constant 0 : i32
    %c0_i32_0 = arith.constant 0 : i32
    %c0_i32_1 = arith.constant 0 : i32
    return %c0_i32, %c0_i32_0 : i32, i32
  }
  func.func @transform_5(%arg0: i32) -> (i32, i32) {
    %c0_i32 = arith.constant 0 : i32
    %c0_i32_0 = arith.constant 0 : i32
    %c0_i32_1 = arith.constant 0 : i32
    return %c0_i32, %c0_i32_0 : i32, i32
  }
  func.func @transform_6(%arg0: i32) -> (i32, i32) {
    %c0_i32 = arith.constant 0 : i32
    %c0_i32_0 = arith.constant 0 : i32
    %c0_i32_1 = arith.constant 0 : i32
    return %c0_i32, %c0_i32_0 : i32, i32
  }
  func.func @transform_7(%arg0: i32) -> (i32, i32) {
    %c0_i32 = arith.constant 0 : i32
    %c0_i32_0 = arith.constant 0 : i32
    %c0_i32_1 = arith.constant 0 : i32
    return %c0_i32, %c0_i32_0 : i32, i32
  }
  func.func @transform_8(%arg0: i32) -> (i32, i32) {
    %c0_i32 = arith.constant 0 : i32
    %c0_i32_0 = arith.constant 0 : i32
    return %arg0, %c0_i32 : i32, i32
  }
}

</mosaic_0001>

<bundles_post_ra>
// kernel: tpu_custom_call.1
= control target key start
LH: loop header
LB: loop body
LE: loop exit
PB: predicated region body
PF: predicated region fallthrough
CT: control target
= control target key end

     0   :  { %14 = vsyncpa [#allocation4], 0  ;;  %s516_s0 = inlined_call_operand.vmem [shape: f32[8,16], index: 0, kind: input, shape index: {}]   ;;  %s517_s1 = inlined_call_operand.vmem [shape: f32[8,2], index: 1, kind: input, shape index: {}]   ;;  %s518_s2 = inlined_call_operand.hbm [shape: f32[16,64], index: 2, kind: input, shape index: {}]   ;;  %s519_s3 = inlined_call_operand.vmem [shape: f32[2,64], index: 3, kind: input, shape index: {}]   ;;  %s520_s4 = inlined_call_operand.vmem [shape: f32[1,64], index: 4, kind: input, shape index: {}]   ;;  %s521_s5 = inlined_call_operand.hbm [shape: f32[64,64], index: 5, kind: input, shape index: {}]   ;;  %s522_s6 = inlined_call_operand.vmem [shape: f32[1,64], index: 6, kind: input, shape index: {}]   ;;  %s523_s7 = inlined_call_operand.<no memory space> [shape: f32[1,1], index: 7, kind: input, shape index: {}]   ;;  %s524_s8 = inlined_call_operand.vmem [shape: f32[8,1], index: 8, kind: output, shape index: {}]  }
   0x1   :  { %15 = vsyncpa [#allocation6], 0  ;;  %s437_s27 = smov [#allocation3]  }
   0x2   :  { %s25_s28 = sshll.u32 %s437_s27, 4  ;;  %s26_s28 = int_to_ptr.vmem [resolvable:$true] %s25_s28 }
   0x3   :  { %s401_s29 = scalar_lea.vmem %s26_s28, 256  ;;  %p406_p1 = scmp.lt.s32.totalorder %s26_s28, %s26_s28 }
   0x4   :  { %p402_p0 = scmp.ne.s32.totalorder %s26_s28, %s401_s29  ;;  %p407_p2 = scmp.lt.s32.totalorder %s401_s29, %s401_s29 }
   0x6   :  { %p408_p3 = por %p407_p2, %p406_p1 }
   0x8   :  { %p409_p4 = pnand %p408_p3, %p402_p0 }
   0xa   :  { %412 = shalt.err (!%p409_p4)
}
   0xb   :  { %s438_s30 = smov 128   ;;  %s439_s9 = smov 8  }
   0xc   :  { %31 = dma.hbm_to_vmem [thread:$0]  %s518_s2, 256, %s26_s28, [#allocation4], %s438_s30, %s438_s30, %s439_s9  }
   0xd   :  { %s440_s12 = smov [#allocation5]  }
   0xe   :  { %s41_s13 = sshll.u32 %s440_s12, 4  ;;  %s42_s13 = int_to_ptr.vmem [resolvable:$true] %s41_s13 }
   0xf   :  { %s421_s14 = scalar_lea.vmem %s42_s13, 1024  ;;  %p426_p6 = scmp.lt.s32.totalorder %s42_s13, %s42_s13 }
  0x10   :  { %p422_p5 = scmp.ne.s32.totalorder %s42_s13, %s421_s14  ;;  %p427_p7 = scmp.lt.s32.totalorder %s421_s14, %s421_s14 }
  0x12   :  { %p428_p8 = por %p427_p7, %p426_p6 }
  0x14   :  { %p429_p9 = pnand %p428_p8, %p422_p5 }
  0x16   :  { %432 = shalt.err (!%p429_p9)
}
  0x17   :  { %47 = dma.hbm_to_vmem [thread:$0]  %s521_s5, 1024, %s42_s13, [#allocation6], %s438_s30, %s438_s30, %s439_s9  }
  0x18   :  { %433 = dma.done.wait [#allocation4], 256  }
  0x19   :  { %434 = vsyncadd [#allocation4], 4294967040 }
  0x1a   :  { %435 = dma.done.wait [#allocation6], 1024  }
  0x1b   :  { %436 = vsyncadd [#allocation6], 4294966272  ;;  %v441_v0 = vmov 0.0   ;;  %vm442_vm0 = vmmov 0   ;;  %vm67_vm1 = vcmask 1041408   ;;  %vm63_vm2 = vcmask 15360  }
  0x1c   :  { %353 = vmatprep.subr.mxu1 %v441_v0  ;;  %355 = vmatprep.mubr.msk.f32.mxu1 %vm442_vm0, %v441_v0  ;;  %v62_v1 = vld [vmem:[%s519_s3] sm:$0x3]  ;;  %v60_v3 = vld [vmem:[#allocation3 + $0x8] sm:$0xff]  ;;  %vm141_vm3 = vcmask 130048   ;;  %v229_v8 = vld [vmem:[#allocation5 + $0x28] sm:$0xff]  ;;  %vm239_vm4 = vcmask 523264   ;;  %v323_v29 = vstv %s523_s7 }
  0x1d   :  { %365 = vmatprep.subr.mxu0 %v441_v0  ;;  %381 = vmatprep.mubr.msk.f32.mxu0 %vm442_vm0, %v441_v0  ;;  %v61_v2 = vld [vmem:[%s517_s1] sm:$0xff]  ;;  %v231_v6 = vld [vmem:[#allocation5 + $0x38] sm:$0xff]  ;;  %v228_v9 = vld [vmem:[#allocation5 + $0x20] sm:$0xff]  ;;  %s443_s22 = smov 96   ;;  %vm318_vm5 = vcmask 261120   ;;  %vm325_vm6 = vcmask 7168  }
  0x1e   :  { %354 = vmatpush3.msk.msra.mxu1 %vm67_vm1, %v62_v1  ;;  %v59_v4 = vld [vmem:[#allocation3] sm:$0xff]  ;;  %366 = vmatpush3.msra.mxu0 %v231_v6  ;;  %v227_v10 = vld [vmem:[#allocation5 + $0x18] sm:$0xff]  ;;  %v225_v12 = vld [vmem:[#allocation5 + $0x8] sm:$0xff] }
  0x1f   :  { %356 = vmatmul.mubr.msk.f32.vlgmr.msra.gmra.mxu1 %vm63_vm2, %v61_v2  ;;  %358 = vmatprep.subr.mxu1 %v441_v0  ;;  %v58_v5 = vld [vmem:[%s516_s0] sm:$0xff]  ;;  %v224_v13 = vld [vmem:[#allocation5] sm:$0xff] }
  0x20   :  { %359 = vmatpush3.msra.mxu1 %v60_v3  ;;  %362 = vmatprep.mubr.msk.f32.mxu1 %vm442_vm0, %v441_v0  ;;  %v230_v7 = vld [vmem:[#allocation5 + $0x30] sm:$0xff] }
  0x21   :  { %360 = vmatprep.subr.mxu1 %v441_v0  ;;  %367 = vmatprep.subr.mxu0 %v441_v0  ;;  %v226_v11 = vld [vmem:[#allocation5 + $0x10] sm:$0xff] }
  0x22   :  { %361 = vmatpush3.msra.mxu1 %v59_v4  ;;  %368 = vmatpush3.msra.mxu0 %v230_v7  ;;  %v336_v17 = vld [vmem:[%s520_s4] ss:$0 sm:$0xff] }
  0x23   :  { %363 = vmatmul.mubr.msk.f32.vlgmr.msra.gmra.mxu1 %vm141_vm3, %v58_v5  ;;  %369 = vmatprep.subr.mxu0 %v441_v0  ;;  %v337_v22 = vld [vmem:[%s522_s6] ss:$0 sm:$0xff] }
  0x24   :  { %370 = vmatpush3.msra.mxu0 %v229_v8 }
  0x25   :  { %371 = vmatprep.subr.mxu0 %v441_v0 }
  0x26   :  { %372 = vmatpush3.msra.mxu0 %v228_v9 }
  0x27   :  { %373 = vmatprep.subr.mxu0 %v441_v0 }
  0x28   :  { %374 = vmatpush3.msra.mxu0 %v227_v10 }
  0x29   :  { %375 = vmatprep.subr.mxu0 %v441_v0 }
  0x2a   :  { %376 = vmatpush3.msra.mxu0 %v226_v11 }
  0x2b   :  { %377 = vmatprep.subr.mxu0 %v441_v0 }
  0x2c   :  { %378 = vmatpush3.msra.mxu0 %v225_v12 }
  0x2d   :  { %379 = vmatprep.subr.mxu0 %v441_v0 }
  0x2e   :  { %380 = vmatpush3.msra.mxu0 %v224_v13 }
  0xdf   :  { %v137_v14 = vpop.f32.mrf.mxu1 }
  0xe1   :  { %v357_v15 = vpop.f32.mrf.mxu1 }
  0xe3   :  { %v211_v16 = vpop.f32.mrf.mxu1 }
  0xe4   :  { %v212_v18 = vadd.f32 %v211_v16, %v137_v14 }
  0xe5   :  { %v364_v19 = vpop.f32.mrf.mxu1 }
  0xe6   :  { %v222_v20 = vadd.f32 %v336_v17, %v212_v18 }
  0xe8   :  { %391 = vtanh.f32 %v222_v20 }
  0xf5   :  { %v392_v21 = vpop.eup %391 }
  0xf6   :  { %382 = vmatmul.mubr.msk.f32.vlgmr.msra.gmra.mxu0 %vm239_vm4, %v392_v21 }
 0x1b6   :  { %v309_v23 = vpop.f32.mrf.mxu0 }
 0x1b7   :  { %v310_v24 = vadd.f32 %v337_v22, %v309_v23 }
 0x1b8   :  { %v383_v25 = vpop.f32.mrf.mxu0 }
 0x1b9   :  { %314 = vrot.lane.b32.xlu0 %v310_v24, %s443_s22 }
 0x22b   :  { %v315_v26 = vpop.permute.xlu0 %314 }
 0x22c   :  { %v317_v27 = vmul.f32 %v315_v26, %v310_v24 }
 0x22e   :  { %v319_v28 = vsel %vm318_vm5, %v317_v27, 0.0 }
 0x22f   :  { %320 = vadd.xlane.f32.xlu0 %v319_v28 }
 0x2b8   :  { %v321_v30 = vpop.xlane.xlu0 %320 }
 0x2b9   :  { %v324_v31 = vadd.f32 %v323_v29, %v321_v30 }
 0x2bb   :  { %326 = vst.msk [vmem:[%s524_s8] sm:$0xff] %vm325_vm6, %v324_v31 }
 0x2bc   :  { %331 = vsyncpa [#allocation4], 1 }
 0x2bd   :  { %332 = vsyncpa [#allocation6], 1 }

</bundles_post_ra>
